<compile_context>
chip_gen: v5e
topology: v5e:2x2
jax: 0.10.0
libtpu: 0.0.40
codegen_flags: <defaults>
</compile_context>

<pallas_src>
import math

import jax
import jax.numpy as jnp
from jax.experimental import pallas as pl
from jax.experimental.pallas import tpu as pltpu


def _round_up(x: int, m: int) -> int:
    return ((x + m - 1) // m) * m


# ---------------------------------------------------------------------------
# Path A: VMEM-resident table, one-hot matmul gather (small / mid vocab).
# ---------------------------------------------------------------------------
def _onehot_gather_kernel(idx_ref, w_ref, o_ref):
    """idx_ref: (tile_n, 1) i32 VMEM; w_ref: (V, D) VMEM (resident); o_ref: (tile_n, D)."""
    tile_n = o_ref.shape[0]
    v = w_ref.shape[0]
    idx = idx_ref[...]                                           # (tile_n, 1) int32
    cols = jax.lax.broadcasted_iota(jnp.int32, (tile_n, v), 1)   # (tile_n, V)
    one_hot = (idx == cols).astype(w_ref.dtype)                  # lane-broadcast compare
    o_ref[...] = jnp.dot(
        one_hot, w_ref[...], preferred_element_type=jnp.float32
    ).astype(o_ref.dtype)


# ---------------------------------------------------------------------------
# Path B: table stays in HBM, manual per-row DMA gather with bounded lag.
# ---------------------------------------------------------------------------
def _dma_gather_kernel(idx_ref, w_hbm, o_ref, sem):
    """idx_ref: (tile_n,) i32 SMEM block; w_hbm: (V, D) HBM; o_ref: (tile_n, D) VMEM."""
    tile_n = o_ref.shape[0]
    lag = min(8, tile_n)   # max in-flight row DMAs

    def row_copy(r):
        row = idx_ref[r]                               # scalar read on the SMEM path
        return pltpu.make_async_copy(
            w_hbm.at[pl.ds(row, 1), :],                # (1, D) source row in HBM
            o_ref.at[pl.ds(r, 1), :],                  # (1, D) destination row in VMEM
            sem,
        )

    # All row copies have identical byte count and share one semaphore, so a
    # fixed-size "wait one row" descriptor accounts for any completed copy and
    # avoids a second pass of SMEM index reads on the drain side.
    def wait_one():
        pltpu.make_async_copy(
            w_hbm.at[pl.ds(0, 1), :],
            o_ref.at[pl.ds(0, 1), :],
            sem,
        ).wait()

    @pl.loop(0, tile_n)
    def _issue(r):
        row_copy(r).start()

        @pl.when(r >= lag)
        def _():
            wait_one()

    @pl.loop(0, lag)
    def _drain(_):
        wait_one()


# ---------------------------------------------------------------------------
# Tiling heuristics / VMEM budgeting (conservative across v5e / v6e / v7x).
# ---------------------------------------------------------------------------
def _pick_resident_tile_n(n: int, v: int, d: int, itemsize: int) -> int:
    t = 1024
    t = min(t, max(8, (2 << 20) // max(4 * v, 1)))            # one-hot working set <= ~2 MiB
    t = min(t, max(8, (8 << 20) // max(2 * d * itemsize, 1)))  # 2x out tile <= ~8 MiB
    t = min(t, _round_up(max(n, 1), 8))
    return max(8, (t // 8) * 8)


def _pick_hbm_tile_n(n: int, d: int, itemsize: int) -> int:
    t = 512
    t = min(t, max(8, (8 << 20) // max(2 * d * itemsize, 1)))  # 2x out tile <= ~8 MiB
    t = min(t, _round_up(max(n, 1), 8))
    return max(8, (t // 8) * 8)


def _resident_vmem_need(v: int, d: int, itemsize: int, tile_n: int) -> int:
    table = v * d * itemsize
    return (2 * table                      # table (assume double-buffered worst case)
            + 2 * tile_n * d * itemsize    # double-buffered output tiles
            + 2 * tile_n * 4               # double-buffered index tiles
            + tile_n * v * 4               # one-hot intermediate (f32)
            + (2 << 20))                   # slack


_RESIDENT_BUDGET = 48 << 20   # safe under v7x's 64 MiB physical VMEM


# ---------------------------------------------------------------------------
# Public wrapper: torch.nn.Embedding(indices) forward.
# ---------------------------------------------------------------------------
def embedding_lookup(indices: jax.Array, weight: jax.Array, *, force_path: str | None = None) -> jax.Array:
    """indices: int array (*batch); weight: (V, D).  Returns (*batch, D)."""
    batch_shape = indices.shape
    n = math.prod(batch_shape) if batch_shape else 1
    v, d = weight.shape
    itemsize = jnp.dtype(weight.dtype).itemsize

    flat = indices.reshape(n).astype(jnp.int32)
    # torch.nn.Embedding raises IndexError on out-of-range indices; we clamp so the
    # lookup can never fault.  # TODO(synk): surface OOB indices to the caller.
    flat = jnp.clip(flat, 0, v - 1)

    if force_path == "resident":
        use_resident = True
    elif force_path == "hbm":
        use_resident = False
    else:
        probe = _pick_resident_tile_n(n, v, d, itemsize)
        use_resident = _resident_vmem_need(v, d, itemsize, probe) <= _RESIDENT_BUDGET

    if use_resident:
        tile_n = _pick_resident_tile_n(n, v, d, itemsize)
        n_pad = _round_up(n, tile_n)
        if n_pad != n:
            flat = jnp.concatenate([flat, jnp.zeros((n_pad - n,), jnp.int32)])
        idx2d = flat.reshape(n_pad, 1)

        need = _resident_vmem_need(v, d, itemsize, tile_n)
        vmem_limit = int(min(56 << 20, max(32 << 20, need)))

        out = pl.pallas_call(
            _onehot_gather_kernel,
            out_shape=jax.ShapeDtypeStruct((n_pad, d), weight.dtype),
            grid=(n_pad // tile_n,),
            in_specs=[
                pl.BlockSpec((tile_n, 1), lambda i: (i, 0)),
                pl.BlockSpec((v, d), lambda i: (0, 0)),   # invariant -> table stays resident
            ],
            out_specs=pl.BlockSpec((tile_n, d), lambda i: (i, 0)),
            compiler_params=pltpu.CompilerParams(
                dimension_semantics=("parallel",),        # disjoint tiles -> megacore on v7x
                vmem_limit_bytes=vmem_limit,
            ),
        )(idx2d, weight)
    else:
        tile_n = _pick_hbm_tile_n(n, d, itemsize)
        n_pad = _round_up(n, tile_n)
        if n_pad != n:
            flat = jnp.concatenate([flat, jnp.zeros((n_pad - n,), jnp.int32)])

        vmem_limit = int(min(56 << 20, max(32 << 20, 4 * tile_n * d * itemsize + (4 << 20))))

        out = pl.pallas_call(
            _dma_gather_kernel,
            out_shape=jax.ShapeDtypeStruct((n_pad, d), weight.dtype),
            grid=(n_pad // tile_n,),
            in_specs=[
                pl.BlockSpec((tile_n,), lambda i: (i,),
                             memory_space=pltpu.MemorySpace.SMEM),   # blocked SMEM indices
                pl.BlockSpec(memory_space=pl.ANY),                    # table stays in HBM
            ],
            out_specs=pl.BlockSpec((tile_n, d), lambda i: (i, 0)),
            scratch_shapes=[pltpu.SemaphoreType.DMA(())],
            compiler_params=pltpu.CompilerParams(
                dimension_semantics=("parallel",),
                vmem_limit_bytes=vmem_limit,
            ),
        )(flat, weight)

    out = out[:n]
    return out.reshape(*batch_shape, d)


if __name__ == "__main__":
    # Module config: Embedding(in_dim=num_embeddings, out_dim=embedding_dim)
    num_embeddings = 16   # in_dim
    embedding_dim = 32    # out_dim

    key = jax.random.PRNGKey(0)
    k_w, k_i = jax.random.split(key)

    # torch.nn.Embedding initializes weight ~ N(0, 1)
    weight = jax.random.normal(k_w, (num_embeddings, embedding_dim), dtype=jnp.float32)
    indices = jax.random.randint(k_i, (2, 8), 0, num_embeddings, dtype=jnp.int32)

    ref = weight[indices]   # plain JAX gather reference

    # Fast path: VMEM-resident table + one-hot MXU gather (auto-selected for this size).
    out = jax.block_until_ready(embedding_lookup(indices, weight))
    assert out.shape == (2, 8, embedding_dim)
    assert jnp.allclose(out, ref, atol=1e-5), "resident-table path mismatch vs reference"

    # Fallback path: HBM-resident table + per-row DMA gather (exercised explicitly).
    out_hbm = jax.block_until_ready(embedding_lookup(indices, weight, force_path="hbm"))
    assert jnp.allclose(out_hbm, ref, atol=1e-6), "HBM DMA-gather path mismatch vs reference"

    print("KERNEL_OK")
</pallas_src>

<mosaic_0001>
module attributes {stable_mosaic.version = 11 : i64} {
  func.func @_onehot_gather_kernel(%arg0: i32, %arg1: memref<16x1xi32, #tpu.memory_space<vmem>>, %arg2: memref<16x32xf32, #tpu.memory_space<vmem>>, %arg3: memref<16x32xf32, #tpu.memory_space<vmem>>) attributes {dimension_semantics = [#tpu.dimension_semantics<parallel>], iteration_bounds = array<i64: 1>, scalar_prefetch = 0 : i64, scratch_operands = 0 : i64, tpu.core_type = #tpu.core_type<tc>, window_params = [{transform_indices = @transform_0, window_bounds = array<i64: 16, 1>}, {pipeline_mode = #tpu.pipeline_mode<synchronous>, transform_indices = @transform_1, window_bounds = array<i64: 16, 32>}, {transform_indices = @transform_2, window_bounds = array<i64: 16, 32>}]} {
    %c0 = arith.constant 0 : index
    %c0_0 = arith.constant 0 : index
    %0 = vector.load %arg1[%c0, %c0_0] : memref<16x1xi32, #tpu.memory_space<vmem>>, vector<16x1xi32>
    %1 = tpu.iota {dimensions = array<i32: 1>} : vector<16x16xi32>
    %2 = vector.broadcast %0 : vector<16x1xi32> to vector<16x16xi32>
    %3 = arith.cmpi eq, %2, %1 : vector<16x16xi32>
    %4 = arith.extui %3 : vector<16x16xi1> to vector<16x16xi32>
    %5 = arith.sitofp %4 : vector<16x16xi32> to vector<16x16xf32>
    %c0_1 = arith.constant 0 : index
    %c0_2 = arith.constant 0 : index
    %6 = vector.load %arg2[%c0_1, %c0_2] : memref<16x32xf32, #tpu.memory_space<vmem>>, vector<16x32xf32>
    %cst = arith.constant dense<0.000000e+00> : vector<16x32xf32>
    %7 = tpu.matmul %5, %6, %cst {dimension_numbers = #tpu.dot_dimension_numbers<[1], [0], [0], [1], [0, 0, 1, 1], [], []>} : vector<16x16xf32>, vector<16x32xf32>, vector<16x32xf32> -> vector<16x32xf32>
    %c0_3 = arith.constant 0 : index
    %c0_4 = arith.constant 0 : index
    %8 = vector.load %arg3[%c0_3, %c0_4] : memref<16x32xf32, #tpu.memory_space<vmem>>, vector<16x32xf32>
    tpu.vector_store %arg3[%c0_3, %c0_4], %7 {strides = array<i32>} : memref<16x32xf32, #tpu.memory_space<vmem>>, vector<16x32xf32>,
    return
  }
  func.func @transform_0(%arg0: i32) -> (i32, i32) {
    %c0_i32 = arith.constant 0 : i32
    %c0_i32_0 = arith.constant 0 : i32
    return %arg0, %c0_i32 : i32, i32
  }
  func.func @transform_1(%arg0: i32) -> (i32, i32) {
    %c0_i32 = arith.constant 0 : i32
    %c0_i32_0 = arith.constant 0 : i32
    %c0_i32_1 = arith.constant 0 : i32
    return %c0_i32, %c0_i32_0 : i32, i32
  }
  func.func @transform_2(%arg0: i32) -> (i32, i32) {
    %c0_i32 = arith.constant 0 : i32
    %c0_i32_0 = arith.constant 0 : i32
    return %arg0, %c0_i32 : i32, i32
  }
}

</mosaic_0001>

<bundles_post_ra>
// kernel: tpu_custom_call.1
= control target key start
LH: loop header
LB: loop body
LE: loop exit
PB: predicated region body
PF: predicated region fallthrough
CT: control target
= control target key end

     0   :  { %v119_v2 = vmov 0   ;;  %s154_s0 = inlined_call_operand.vmem [shape: s32[16,1], index: 0, kind: input, shape index: {}]   ;;  %s155_s1 = inlined_call_operand.vmem [shape: f32[16,32], index: 1, kind: input, shape index: {}]   ;;  %s156_s2 = inlined_call_operand.hbm [shape: f32[16,32], index: 2, kind: output, shape index: {}]  }
   0x1   :  { %v12_v0 = vld [vmem:[%s154_s0] sm:$0xff]  ;;  %v29_v1 = vld [vmem:[%s155_s1 + $0x8] sm:$0xff]  ;;  %92 = vset.pattern.permute.xlu0 %v119_v2 }
   0x2   :  { %51 = vmatpush.msra.mxu0 %v29_v1 }
   0x3   :  { %7 = vsyncpa [#allocation3], 0  ;;  %17 = vperm.xlu0 %92, %v12_v0   ;;  %85 = vmatpush.msra.mxu1 %v29_v1  ;;  %v13_v3 = vld [vmem:[%s154_s0 + $0x8] sm:$0xff]  ;;  %v28_v4 = vld [vmem:[%s155_s1] sm:$0xff]  ;;  %v14_v5 = vlaneseq  ;;  %vm30_vm0 = vcmask 130048   ;;  %v120_v8 = vmov 0.0  }
   0x4   :  { %52 = vmatpush.msra.mxu0 %v28_v4  ;;  %vm60_vm3 = vcmask 261120   ;;  %s121_s0 = smov [#allocation2]   ;;  %s69_s19 = sshll.u32 %s156_s2, 4  ;;  %s70_s19 = int_to_ptr.hbm [resolvable:$true] %s69_s19 }
   0x5   :  { %86 = vmatpush.msra.mxu1 %v28_v4  ;;  %v15_v6 = vand.u32 127, %v14_v5  ;;  %s67_s17 = sshll.u32 %s121_s0, 4  ;;  %s122_s20 = smov 128   ;;  %s68_s17 = int_to_ptr.vmem [resolvable:$true] %s67_s17 }
   0x6   :  { %s123_s21 = smov 8  }
   0xb   :  { %20 = vperm.xlu0 %92, %v13_v3  }
  0x75   :  { %v18_v7 = vpop.permute.xlu0 %17 }
  0x76   :  { %vm22_vm1 = vcmp.eq.s32.totalorder %v18_v7, %v15_v6 }
  0x77   :  { %v81_v9 = vsel %vm22_vm1, 1.0, %v120_v8 }
  0x78   :  { %83 = vmatmul.msk.f32.vlgmr.msra.gmra.mxu0 %vm30_vm0, %v81_v9 }
  0x7d   :  { %v21_v10 = vpop.permute.xlu0 %20 }
  0x7e   :  { %vm23_vm2 = vcmp.eq.s32.totalorder %v21_v10, %v15_v6 }
  0x7f   :  { %v82_v11 = vsel %vm23_vm2, 1.0, %v120_v8 }
  0x80   :  { %84 = vmatmul.msk.f32.vlgmr.msra.gmra.mxu1 %vm30_vm0, %v82_v11 }
  0xf5   :  { %v54_v12 = vpop.f32.mrf.mxu0 }
  0xf6   :  { %61 = vst.msk [vmem:[#allocation2] sm:$0xff] %vm60_vm3, %v54_v12 }
  0xfd   :  { %v57_v13 = vpop.f32.mrf.mxu1 }
  0xfe   :  { %62 = vst.msk [vmem:[#allocation2 + $0x8] sm:$0xff] %vm60_vm3, %v57_v13 }
  0xff   :  { %75 = dma.vmem_to_hbm [thread:$0]  %s68_s17, 256, %s70_s19, [#allocation3], %s122_s20, %s122_s20, %s123_s21  }
 0x100   :  { %117 = dma.done.wait [#allocation3], 256  }
 0x101   :  { %118 = vsyncadd [#allocation3], 4294967040 }
 0x102   :  { %80 = vsyncpa [#allocation3], 1 }

</bundles_post_ra>
